<compile_context>
chip_gen: v7x
topology: tpu7x:2x2x1
jax: 0.10.0
libtpu: 0.0.40
codegen_flags: <defaults>
</compile_context>

<pallas_src>
import jax
import jax.numpy as jnp
from jax import lax
from jax.experimental import pallas as pl
from jax.experimental.pallas import tpu as pltpu

BN_EPS = 1e-3
K = 3          # conv / pool kernel size
STRIDE = 2


# ------------------------------- Pallas kernel -------------------------------

def _mixed3a_kernel(x_ref, w_ref, scale_ref, bias_ref, o_ref):
    # x_ref:     (NB, Lpad, Cin)        channels-last input block, f32
    # w_ref:     (K*Cin, Cout)          im2col conv weight, bf16
    # scale_ref: (1, Cout)              folded BN scale, f32
    # bias_ref:  (1, Cout)              folded BN bias,  f32
    # o_ref:     (NB, Lout, Cin+Cout)   fused output: [maxpool | conv branch]
    NB, Lpad, Cin = x_ref.shape
    Lout = o_ref.shape[1]
    Cout = w_ref.shape[1]
    half = Lpad // 2                    # wrapper guarantees Lpad is even

    x = x_ref[...]                      # (NB, Lpad, Cin), f32

    # Stride-2 tap gather using unit-stride ops only (interpreter-safe, no
    # strided / integer ref indexing): split positions into (even, odd) pairs,
    # then take static windows.  tap_k[:, t, :] == x[:, 2*t + k, :].
    pairs = x.reshape(NB, half, 2, Cin)
    even = pairs[:, :, 0, :]            # positions 0, 2, 4, ...
    odd = pairs[:, :, 1, :]             # positions 1, 3, 5, ...
    tap0 = even[:, :Lout, :]
    tap1 = odd[:, :Lout, :]
    tap2 = even[:, 1:Lout + 1, :]

    # --- branch 0: MaxPool1d(3, stride=2) — exact, f32 ------------------------
    mp = jnp.maximum(jnp.maximum(tap0, tap1), tap2)

    # --- branch 1: Conv1d(64->96, k=3, s=2) + folded BN + ReLU ----------------
    # Batch folded into matmul M: (NB*Lout, K*Cin) @ (K*Cin, Cout) on the MXU,
    # bf16 operands (cast per-tap before the lane splice), f32 accumulation,
    # f32 BN/ReLU epilogue.
    xcol = jnp.concatenate(
        [tap0.astype(jnp.bfloat16),
         tap1.astype(jnp.bfloat16),
         tap2.astype(jnp.bfloat16)], axis=-1)            # (NB, Lout, K*Cin)
    acc = jnp.dot(xcol.reshape(NB * Lout, K * Cin), w_ref[...],
                  preferred_element_type=jnp.float32)     # (NB*Lout, Cout)
    conv = jnp.maximum(acc * scale_ref[...] + bias_ref[...], 0.0)
    conv = conv.reshape(NB, Lout, Cout)

    # Two direct lane-slice stores (torch.cat((pool, conv), dim=1) order).
    o_ref[:, :, :Cin] = mp.astype(o_ref.dtype)
    o_ref[:, :, Cin:] = conv.astype(o_ref.dtype)


# -------------------------------- JAX wrappers --------------------------------

def mixed_3a_nlc(x_nlc, params):
    """Channels-last Mixed_3a: (N, L, 64) -> (N, Lout, 160).  No transposes."""
    w = params["w"]                       # (K, Cin, Cout)
    scale = params["scale"]               # (Cout,)
    bias = params["bias"]                 # (Cout,)
    _, Cin, Cout = w.shape
    N, L, C = x_nlc.shape
    assert C == Cin and L >= K
    Lout = (L - K) // STRIDE + 1
    Ctot = Cin + Cout                     # maxpool channels then conv channels

    # Pad length to even so the in-kernel even/odd pair reshape is exact; the
    # padded position is never inside any pooling / conv window.
    if L % 2:
        x_nlc = jnp.pad(x_nlc, ((0, 0), (0, 1), (0, 0)))
    Lpad = x_nlc.shape[1]

    # Batch block size: fold batch into the matmul M, targeting ~256 MXU rows
    # (v6e/v7x; also fine for v5e at these sizes).  Pick a divisor of N so the
    # grid tiles exactly; for small N (e.g. the N=2 test) the grid collapses to
    # a single step, removing per-step overhead.
    NB = min(N, max(1, 256 // Lout))
    while N % NB:
        NB -= 1
    grid = (N // NB,)

    w2d = w.reshape(K * Cin, Cout).astype(jnp.bfloat16)   # im2col weight
    scale2 = scale.reshape(1, Cout).astype(jnp.float32)
    bias2 = bias.reshape(1, Cout).astype(jnp.float32)

    cost = pl.CostEstimate(
        flops=2 * N * Lout * (K * Cin) * Cout,
        transcendentals=0,
        bytes_accessed=int(x_nlc.size) * 4 + int(w2d.size) * 2
                       + N * Lout * Ctot * 4)

    return pl.pallas_call(
        _mixed3a_kernel,
        out_shape=jax.ShapeDtypeStruct((N, Lout, Ctot), x_nlc.dtype),
        grid_spec=pltpu.PrefetchScalarGridSpec(
            num_scalar_prefetch=0,
            grid=grid,
            in_specs=[
                pl.BlockSpec((NB, Lpad, Cin), lambda n: (n, 0, 0)),
                pl.BlockSpec((K * Cin, Cout), lambda n: (0, 0)),   # VMEM-resident
                pl.BlockSpec((1, Cout), lambda n: (0, 0)),
                pl.BlockSpec((1, Cout), lambda n: (0, 0)),
            ],
            out_specs=pl.BlockSpec((NB, Lout, Ctot), lambda n: (n, 0, 0)),
        ),
        compiler_params=pltpu.CompilerParams(
            dimension_semantics=("parallel",)),   # feeds both v7x TCs when grid > 1
        cost_estimate=cost,
    )(x_nlc, w2d, scale2, bias2)


def mixed_3a(x_ncl, params):
    """PyTorch-layout adapter: (N, 64, L) -> (N, 160, Lout).

    Layout plumbing only — prefer `mixed_3a_nlc` inside a channels-last network
    so these boundary transposes disappear entirely.
    """
    out_nlc = mixed_3a_nlc(jnp.transpose(x_ncl, (0, 2, 1)), params)
    return jnp.transpose(out_nlc, (0, 2, 1))


# ----------------------- deterministic parameter init ------------------------

def make_basic_conv1d_params(key, cin, cout, k):
    kw, kg, kb, km, kv = jax.random.split(key, 5)
    w = jax.random.normal(kw, (k, cin, cout), jnp.float32) / jnp.sqrt(cin * k)
    gamma = jax.random.uniform(kg, (cout,), jnp.float32, 0.5, 1.5)
    beta = jax.random.normal(kb, (cout,), jnp.float32) * 0.1
    rmean = jax.random.normal(km, (cout,), jnp.float32) * 0.1
    rvar = jax.random.uniform(kv, (cout,), jnp.float32, 0.5, 1.5)
    scale = gamma / jnp.sqrt(rvar + BN_EPS)            # fold BN (eval mode)
    bias = beta - rmean * scale
    return dict(w=w, scale=scale, bias=bias)


# ---------------------------- pure-JAX reference ------------------------------

def mixed_3a_ref(x_ncl, params):
    # Same bf16 matmul operands / f32 accumulation as the kernel, so the check
    # isolates kernel correctness from the (intended) bf16 quantization.
    x = jnp.transpose(x_ncl, (0, 2, 1))                       # (N, L, C)
    mp = lax.reduce_window(x, -jnp.inf, lax.max,
                           (1, K, 1), (1, STRIDE, 1), "VALID")
    conv = lax.conv_general_dilated(
        x.astype(jnp.bfloat16), params["w"].astype(jnp.bfloat16),
        window_strides=(STRIDE,), padding=[(0, 0)],
        dimension_numbers=("NWC", "WIO", "NWC"),
        preferred_element_type=jnp.float32)
    y = jnp.maximum(conv * params["scale"] + params["bias"], 0.0)
    out = jnp.concatenate([mp, y.astype(x.dtype)], axis=-1)
    return jnp.transpose(out, (0, 2, 1))                      # NLC -> NCL


# ------------------------------------ main ------------------------------------

if __name__ == "__main__":
    key = jax.random.PRNGKey(0)
    kp, kx = jax.random.split(key, 2)
    params = make_basic_conv1d_params(kp, 64, 96, K)

    # input: (N=2, C=64, L=16) — channel count fixed by the module.
    x = jax.random.normal(kx, (2, 64, 16), jnp.float32)

    out = jax.block_until_ready(mixed_3a(x, params))
    assert out.shape == (2, 64 + 96, 7), out.shape

    ref = jax.block_until_ready(mixed_3a_ref(x, params))
    max_err = float(jnp.max(jnp.abs(out - ref)))
    assert jnp.allclose(out, ref, atol=2e-3, rtol=2e-3), max_err

    print("KERNEL_OK")
</pallas_src>

<mosaic_0001>
module attributes {stable_mosaic.version = 11 : i64} {
  func.func @_mixed3a_kernel(%arg0: i32, %arg1: memref<2x16x64xf32, #tpu.memory_space<vmem>>, %arg2: memref<192x96xbf16, #tpu.memory_space<vmem>>, %arg3: memref<1x96xf32, #tpu.memory_space<vmem>>, %arg4: memref<1x96xf32, #tpu.memory_space<vmem>>, %arg5: memref<2x7x160xf32, #tpu.memory_space<vmem>>) attributes {dimension_semantics = [#tpu.dimension_semantics<parallel>], iteration_bounds = array<i64: 1>, scalar_prefetch = 0 : i64, scratch_operands = 0 : i64, tpu.core_type = #tpu.core_type<tc>, window_params = [{transform_indices = @transform_0, window_bounds = array<i64: 2, 16, 64>}, {pipeline_mode = #tpu.pipeline_mode<synchronous>, transform_indices = @transform_1, window_bounds = array<i64: 192, 96>}, {pipeline_mode = #tpu.pipeline_mode<synchronous>, transform_indices = @transform_2, window_bounds = array<i64: 1, 96>}, {pipeline_mode = #tpu.pipeline_mode<synchronous>, transform_indices = @transform_3, window_bounds = array<i64: 1, 96>}, {transform_indices = @transform_4, window_bounds = array<i64: 2, 7, 160>}]} {
    %c0 = arith.constant 0 : index
    %c0_0 = arith.constant 0 : index
    %c0_1 = arith.constant 0 : index
    %0 = vector.load %arg1[%c0, %c0_0, %c0_1] : memref<2x16x64xf32, #tpu.memory_space<vmem>>, vector<2x16x64xf32>
    %1 = vector.shape_cast %0 : vector<2x16x64xf32> to vector<2x8x2x64xf32>
    %2 = vector.extract_strided_slice %1 {offsets = [0, 0, 0, 0], sizes = [2, 8, 1, 64], strides = [1, 1, 1, 1]} : vector<2x8x2x64xf32> to vector<2x8x1x64xf32>
    %3 = vector.shape_cast %2 : vector<2x8x1x64xf32> to vector<2x8x64xf32>
    %4 = vector.extract_strided_slice %1 {offsets = [0, 0, 1, 0], sizes = [2, 8, 1, 64], strides = [1, 1, 1, 1]} : vector<2x8x2x64xf32> to vector<2x8x1x64xf32>
    %5 = vector.shape_cast %4 : vector<2x8x1x64xf32> to vector<2x8x64xf32>
    %6 = vector.extract_strided_slice %3 {offsets = [0, 0, 0], sizes = [2, 7, 64], strides = [1, 1, 1]} : vector<2x8x64xf32> to vector<2x7x64xf32>
    %7 = vector.extract_strided_slice %5 {offsets = [0, 0, 0], sizes = [2, 7, 64], strides = [1, 1, 1]} : vector<2x8x64xf32> to vector<2x7x64xf32>
    %8 = vector.extract_strided_slice %3 {offsets = [0, 1, 0], sizes = [2, 7, 64], strides = [1, 1, 1]} : vector<2x8x64xf32> to vector<2x7x64xf32>
    %9 = arith.maximumf %6, %7 : vector<2x7x64xf32>
    %10 = arith.maximumf %9, %8 : vector<2x7x64xf32>
    %11 = arith.truncf %6 : vector<2x7x64xf32> to vector<2x7x64xbf16>
    %12 = arith.truncf %7 : vector<2x7x64xf32> to vector<2x7x64xbf16>
    %13 = arith.truncf %8 : vector<2x7x64xf32> to vector<2x7x64xbf16>
    %14 = tpu.concatenate %11, %12, %13 in 2 : vector<2x7x64xbf16>, vector<2x7x64xbf16>, vector<2x7x64xbf16> -> vector<2x7x192xbf16>
    %15 = vector.shape_cast %14 : vector<2x7x192xbf16> to vector<14x192xbf16>
    %c0_2 = arith.constant 0 : index
    %c0_3 = arith.constant 0 : index
    %16 = vector.load %arg2[%c0_2, %c0_3] : memref<192x96xbf16, #tpu.memory_space<vmem>>, vector<192x96xbf16>
    %cst = arith.constant dense<0.000000e+00> : vector<14x96xf32>
    %17 = tpu.matmul %15, %16, %cst {dimension_numbers = #tpu.dot_dimension_numbers<[1], [0], [0], [1], [0, 0, 1, 1], [], []>} : vector<14x192xbf16>, vector<192x96xbf16>, vector<14x96xf32> -> vector<14x96xf32>
    %c0_4 = arith.constant 0 : index
    %c0_5 = arith.constant 0 : index
    %18 = vector.load %arg3[%c0_4, %c0_5] : memref<1x96xf32, #tpu.memory_space<vmem>>, vector<1x96xf32>
    %19 = vector.broadcast %18 : vector<1x96xf32> to vector<14x96xf32>
    %20 = arith.mulf %17, %19 : vector<14x96xf32>
    %c0_6 = arith.constant 0 : index
    %c0_7 = arith.constant 0 : index
    %21 = vector.load %arg4[%c0_6, %c0_7] : memref<1x96xf32, #tpu.memory_space<vmem>>, vector<1x96xf32>
    %22 = vector.broadcast %21 : vector<1x96xf32> to vector<14x96xf32>
    %23 = arith.addf %20, %22 : vector<14x96xf32>
    %cst_8 = arith.constant 0.000000e+00 : f32
    %24 = vector.broadcast %cst_8 : f32 to vector<14x96xf32>
    %25 = arith.maximumf %23, %24 : vector<14x96xf32>
    %26 = vector.shape_cast %25 : vector<14x96xf32> to vector<2x7x96xf32>
    %c0_9 = arith.constant 0 : index
    %c0_10 = arith.constant 0 : index
    %c0_11 = arith.constant 0 : index
    %27 = vector.load %arg5[%c0_9, %c0_10, %c0_11] : memref<2x7x160xf32, #tpu.memory_space<vmem>>, vector<2x7x64xf32>
    tpu.vector_store %arg5[%c0_9, %c0_10, %c0_11], %10 {strides = array<i32>} : memref<2x7x160xf32, #tpu.memory_space<vmem>>, vector<2x7x64xf32>,
    %c0_12 = arith.constant 0 : index
    %c0_13 = arith.constant 0 : index
    %c64 = arith.constant 64 : index
    %28 = vector.load %arg5[%c0_12, %c0_13, %c64] : memref<2x7x160xf32, #tpu.memory_space<vmem>>, vector<2x7x96xf32>
    tpu.vector_store %arg5[%c0_12, %c0_13, %c64], %26 {strides = array<i32>} : memref<2x7x160xf32, #tpu.memory_space<vmem>>, vector<2x7x96xf32>,
    return
  }
  func.func @transform_0(%arg0: i32) -> (i32, i32, i32) {
    %c0_i32 = arith.constant 0 : i32
    %c0_i32_0 = arith.constant 0 : i32
    %c0_i32_1 = arith.constant 0 : i32
    return %arg0, %c0_i32, %c0_i32_0 : i32, i32, i32
  }
  func.func @transform_1(%arg0: i32) -> (i32, i32) {
    %c0_i32 = arith.constant 0 : i32
    %c0_i32_0 = arith.constant 0 : i32
    %c0_i32_1 = arith.constant 0 : i32
    return %c0_i32, %c0_i32_0 : i32, i32
  }
  func.func @transform_2(%arg0: i32) -> (i32, i32) {
    %c0_i32 = arith.constant 0 : i32
    %c0_i32_0 = arith.constant 0 : i32
    %c0_i32_1 = arith.constant 0 : i32
    return %c0_i32, %c0_i32_0 : i32, i32
  }
  func.func @transform_3(%arg0: i32) -> (i32, i32) {
    %c0_i32 = arith.constant 0 : i32
    %c0_i32_0 = arith.constant 0 : i32
    %c0_i32_1 = arith.constant 0 : i32
    return %c0_i32, %c0_i32_0 : i32, i32
  }
  func.func @transform_4(%arg0: i32) -> (i32, i32, i32) {
    %c0_i32 = arith.constant 0 : i32
    %c0_i32_0 = arith.constant 0 : i32
    %c0_i32_1 = arith.constant 0 : i32
    return %arg0, %c0_i32, %c0_i32_0 : i32, i32, i32
  }
}

</mosaic_0001>

<bundles_post_ra>
// kernel: tpu_custom_call.1
= control target key start
LH: loop header
LB: loop body
LE: loop exit
PB: predicated region body
PF: predicated region fallthrough
CT: control target
= control target key end

     0   :  { %9 = vsyncpa [#allocation3], 0  ;;  %s1438_s0 = inlined_call_operand.hbm [shape: f32[2,16,64], index: 0, kind: input, shape index: {}]   ;;  %s1439_s1 = inlined_call_operand.hbm [shape: bf16[192,96], index: 1, kind: input, shape index: {}]   ;;  %s1440_s2 = inlined_call_operand.vmem [shape: f32[1,96], index: 2, kind: input, shape index: {}]   ;;  %s1441_s3 = inlined_call_operand.vmem [shape: f32[1,96], index: 3, kind: input, shape index: {}]   ;;  %s1442_s4 = inlined_call_operand.vmem [shape: f32[2,7,160], index: 4, kind: output, shape index: {}]  }
   0x1   :  { %10 = vsyncpa [#allocation5], 0  ;;  %s1046_s15 = smov [#allocation2]   ;;  %s998_s19 = scalar_lea.hbm %s1438_s0, 512 }
   0x2   :  { %s16_s16 = sshll.u32 %s1046_s15, 4  ;;  %p999_p0 = scmp.ne.s32.totalorder %s1438_s0, %s998_s19  ;;  %s17_s16 = int_to_ptr.vmem [resolvable:$true] %s16_s16 }
   0x3   :  { %p1002_p1 = scmp.lt.u32.totalorder %s998_s19, %s1438_s0 }
   0x5   :  { %p1004_p2 = pnand %p1002_p1, %p999_p0 }
   0x7   :  { %1007 = shalt.err (!%p1004_p2)
}
   0x8   :  { %s1008_s24 = scalar_lea.vmem %s17_s16, 512  ;;  %p1013_p4 = scmp.lt.s32.totalorder %s17_s16, %s17_s16 }
   0x9   :  { %p1009_p3 = scmp.ne.s32.totalorder %s17_s16, %s1008_s24  ;;  %p1014_p5 = scmp.lt.s32.totalorder %s1008_s24, %s1008_s24 }
   0xb   :  { %p1015_p6 = por %p1014_p5, %p1013_p4 }
   0xd   :  { %p1016_p7 = pnand %p1015_p6, %p1009_p3 }
   0xf   :  { %1019 = shalt.err (!%p1016_p7)
}
  0x10   :  { %s1047_s25 = smov 128   ;;  %s1048_s26 = smov 8  }
  0x11   :  { %22 = dma.hbm_to_vmem [thread:$0]  %s1438_s0, 512, %s17_s16, [#allocation3], %s1047_s25, %s1047_s25, %s1048_s26  }
  0x12   :  { %s1049_s29 = smov [#allocation4]   ;;  %s1020_s7 = scalar_lea.hbm %s1439_s1, 1536 }
  0x13   :  { %s28_s30 = sshll.u32 %s1049_s29, 4  ;;  %p1021_p8 = scmp.ne.s32.totalorder %s1439_s1, %s1020_s7  ;;  %s29_s30 = int_to_ptr.vmem [resolvable:$true] %s28_s30 }
  0x14   :  { %p1024_p9 = scmp.lt.u32.totalorder %s1020_s7, %s1439_s1 }
  0x16   :  { %p1026_p10 = pnand %p1024_p9, %p1021_p8 }
  0x18   :  { %1029 = shalt.err (!%p1026_p10)
}
  0x19   :  { %s1030_s12 = scalar_lea.vmem %s29_s30, 1536  ;;  %p1035_p12 = scmp.lt.s32.totalorder %s29_s30, %s29_s30 }
  0x1a   :  { %p1031_p11 = scmp.ne.s32.totalorder %s29_s30, %s1030_s12  ;;  %p1036_p13 = scmp.lt.s32.totalorder %s1030_s12, %s1030_s12 }
  0x1c   :  { %p1037_p0 = por %p1036_p13, %p1035_p12 }
  0x1e   :  { %p1038_p1 = pnand %p1037_p0, %p1031_p11 }
  0x20   :  { %1041 = shalt.err (!%p1038_p1)
}
  0x21   :  { %s1050_s0 = smov 64   ;;  %s1051_s13 = smov 4  }
  0x22   :  { %34 = dma.hbm_to_vmem [thread:$0]  %s1439_s1, 1536, %s29_s30, [#allocation5], %s1050_s0, %s1050_s0, %s1051_s13  }
  0x23   :  { %1042 = dma.done.wait [#allocation3], 512  }
  0x24   :  { %1043 = vsyncadd [#allocation3], 4294966784 }
  0x25   :  { %1044 = dma.done.wait [#allocation5], 1536  }
  0x26   :  { %1045 = vsyncadd [#allocation5], 4294965760  ;;  %v58_v0 = vlaneseq  ;;  %v1052_v1 = vmov 1983009808   ;;  %v1053_v5 = vmov 0   ;;  %v46_v7 = vld [vmem:[#allocation2] sm:$0xff] }
  0x27   :  { %v56_v2 = vunpack.c.l.s4 %v1052_v1  ;;  %579 = vmatprep.subr.bf16.mxu0 %v1053_v5  ;;  %v47_v8 = vld [vmem:[#allocation2 + $0x8] sm:$0xff]  ;;  %vm253_vm0 = vcmask 1041409   ;;  %v48_v9 = vld [vmem:[#allocation2 + $0x10] sm:$0xff]  ;;  %v54_v10 = vcombine.high %v46_v7, %v46_v7  ;;  %vm256_vm1 = vcmask 1042434   ;;  %v986_v15 = vld [vmem:[#allocation4] sm:$0xff]  }
  0x28   :  { %v1106_v3 = vshrl.u32 %v58_v0, 7  ;;  %v71_v12 = vcombine.high %v47_v8, %v47_v8  ;;  %vm259_vm2 = vcmask 1043459   ;;  %v88_v14 = vcombine.high %v48_v9, %v48_v9  ;;  %v49_v20 = vld [vmem:[#allocation2 + $0x18] sm:$0xff]  ;;  %580 = vmatpush1.bf16.msra.mxu0 %v986_v15  ;;  %v987_v25 = vld [vmem:[#allocation4 + $0x8] sm:$0xff]   ;;  %v988_v42 = vld [vmem:[#allocation4 + $0x10] sm:$0xff]  }
  0x29   :  { %v57_v4 = vunpack.c.0.s8 %v56_v2  ;;  %581 = vmatprep.subr.bf16.mxu0 %v1053_v5  ;;  %v105_v33 = vcombine.high %v49_v20, %v49_v20  ;;  %vm262_vm3 = vcmask 1044484   ;;  %vm265_vm4 = vcmask 1045509   ;;  %v989_v52 = vld [vmem:[#allocation4 + $0x18] sm:$0xff]  }
  0x2a   :  { %vm268_vm5 = vcmask 1046534   ;;  %vm334_vm6 = vcmask 523264   ;;  %vm822_vm7 = vcmask 522240   ;;  %vm927_vm8 = vcmask 1047040  }
  0x2b   :  { %v60_v6 = vsub.s32 %v57_v4, %v1106_v3  ;;  %vm929_vm9 = vcmask 260096  }
  0x2c   :  { %582 = vmatpush1.bf16.msra.mxu0 %v987_v25 }
  0x2d   :  { %v1110_v11 = vrot.slane %v46_v7, %v60_v6  ;;  %v1112_v13 = vrot.slane %v47_v8, %v60_v6  ;;  %v1114_v16 = vrot.slane %v54_v10, %v60_v6  ;;  %v1120_v18 = vrot.slane %v71_v12, %v60_v6  ;;  %583 = vmatprep.subr.bf16.mxu0 %v1053_v5  ;;  %v990_v10 = vld [vmem:[#allocation4 + $0x20] sm:$0xff]  }
  0x2e   :  { %v1130_v23 = vrot.slane %v48_v9, %v60_v6  ;;  %v1132_v24 = vrot.slane %v88_v14, %v60_v6  ;;  %v1166_v41 = vrot.slane %v49_v20, %v60_v6  ;;  %v1182_v51 = vrot.slane %v105_v33, %v60_v6 }
  0x2f   :  { %v1118_v17 = vcombine.high %v1110_v11, %v1110_v11  ;;  %v1124_v19 = vcombine.high %v1112_v13, %v1112_v13  ;;  %v208_v21 = vpack.c.bf16 %v1110_v11, %v1110_v11  ;;  %v212_v22 = vpack.c.bf16 %v1112_v13, %v1112_v13 }
  0x30   :  { %v1136_v26 = vcombine.high %v1114_v16, %v1114_v16  ;;  %v210_v28 = vpack.c.bf16 %v1114_v16, %v1114_v16  ;;  %v214_v30 = vpack.c.bf16 %v1120_v18, %v1120_v18  ;;  %v1164_v40 = vcombine.high %v1130_v23, %v1130_v23  ;;  %584 = vmatpush1.bf16.msra.mxu0 %v988_v42 }
  0x31   :  { %v209_v27 = vpack.c.bf16 %v1118_v17, %v1118_v17  ;;  %v213_v29 = vpack.c.bf16 %v1124_v19, %v1124_v19  ;;  %v1147_v31 = vunpack.c.l.b16 %v208_v21  ;;  %v1149_v32 = vunpack.c.l.b16 %v212_v22  ;;  %585 = vmatprep.subr.bf16.mxu0 %v1053_v5 }
  0x32   :  { %v211_v34 = vpack.c.bf16 %v1136_v26, %v1136_v26  ;;  %v1155_v36 = vunpack.c.l.b16 %v210_v28  ;;  %v1159_v38 = vunpack.c.l.b16 %v214_v30  ;;  %v1172_v44 = vcombine.high %v1132_v24, %v1132_v24 }
  0x33   :  { %v1153_v35 = vunpack.c.l.b16 %v209_v27  ;;  %v1157_v37 = vunpack.c.l.b16 %v213_v29  ;;  %v284_v39 = vrot.slane %v1147_v31, 1  ;;  %v290_v47 = vrot.slane %v1149_v32, 5 }
  0x34   :  { %v1168_v43 = vunpack.c.l.b16 %v211_v34  ;;  %v286_v46 = vrot.slane %v1155_v36, 7  ;;  %v294_v50 = vrot.slane %v1159_v38, 3  ;;  %v1187_v54 = vcombine.high %v1166_v41, %v1166_v41  ;;  %586 = vmatpush1.bf16.msra.mxu0 %v989_v52  ;;  %v991_v34 = vld [vmem:[#allocation4 + $0x28] sm:$0xff]  }
  0x35   :  { %v285_v45 = vsel %vm253_vm0, %v1153_v35, %v284_v39  ;;  %v292_v49 = vrot.slane %v1157_v37, 4  ;;  %v215_v55 = vpack.c.bf16 %v1130_v23, %v1130_v23  ;;  %v216_v56 = vpack.c.bf16 %v1164_v40, %v1164_v40  ;;  %587 = vmatprep.subr.bf16.mxu0 %v1053_v5 }
  0x36   :  { %v288_v48 = vrot.slane %v1168_v43, 6  ;;  %v287_v53 = vsel %vm256_vm1, %v286_v46, %v285_v45  ;;  %v217_v58 = vpack.c.bf16 %v1132_v24, %v1132_v24  ;;  %v218_v59 = vpack.c.bf16 %v1172_v44, %v1172_v44 }
  0x37   :  { %v219_v60 = vpack.c.bf16 %v1166_v41, %v1166_v41  ;;  %v220_v62 = vpack.c.bf16 %v1187_v54, %v1187_v54  ;;  %v221_v63 = vpack.c.bf16 %v1182_v51, %v1182_v51  ;;  %v245_v0 = vunpack.c.l.b16 %v215_v55 }
  0x38   :  { %v289_v57 = vsel %vm259_vm2, %v288_v48, %v287_v53  ;;  %v247_v2 = vunpack.c.l.b16 %v217_v58  ;;  %v248_v4 = vunpack.c.l.b16 %v218_v59  ;;  %v246_v7 = vunpack.c.l.b16 %v216_v56  ;;  %588 = vmatpush1.bf16.msra.mxu0 %v990_v10 }
  0x39   :  { %v291_v61 = vsel %vm262_vm3, %v290_v47, %v289_v57  ;;  %v249_v8 = vunpack.c.l.b16 %v219_v60  ;;  %v1212_v9 = vunpack.c.l.b16 %v220_v62  ;;  %v252_v12 = vrot.slane %v1153_v35, 7  ;;  %589 = vmatprep.subr.bf16.mxu0 %v1053_v5 }
  0x3a   :  { %v293_v1 = vsel %vm265_vm4, %v292_v49, %v291_v61  ;;  %v251_v15 = vunpack.c.l.b16 %v221_v63  ;;  %v255_v20 = vrot.slane %v1155_v36, 6  ;;  %v296_v21 = vrot.slane %v245_v0, 1 }
  0x3b   :  { %v295_v6 = vsel %vm268_vm5, %v294_v50, %v293_v1  ;;  %v258_v22 = vrot.slane %v1168_v43, 5  ;;  %v298_v25 = vrot.slane %v247_v2, 7  ;;  %v300_v27 = vrot.slane %v248_v4, 6 }
  0x3c   :  { %v308_v14 = vpack.c.b16 %v295_v6, %v295_v6  ;;  %v302_v28 = vrot.slane %v249_v8, 5  ;;  %v261_v29 = vrot.slane %v1149_v32, 4  ;;  %v297_v30 = vsel %vm253_vm0, %v246_v7, %v296_v21  ;;  %590 = vmatpush1.bf16.msra.mxu0 %v991_v34  ;;  %v994_v21 = vld [vmem:[#allocation4 + $0x40] sm:$0xff]  }
  0x3d   :  { %v304_v33 = vrot.slane %v1212_v9, 4  ;;  %v299_v39 = vsel %vm256_vm1, %v298_v25, %v297_v30  ;;  %v306_v42 = vrot.slane %v251_v15, 3  ;;  %v254_v36 = vsel %vm253_vm0, %v252_v12, %v1147_v31  ;;  %591 = vmatprep.subr.bf16.mxu0 %v1053_v5 }
  0x3e   :  { %310 = vrot.lane.b32.xlu0 %v308_v14, %s1050_s0  ;;  %v318_v43 = vsel %vm253_vm0, %v286_v46, %v1153_v35  ;;  %v264_v45 = vrot.slane %v1157_v37, 3  ;;  %v267_v32 = vrot.slane %v1159_v38, 2  ;;  %v301_v52 = vsel %vm259_vm2, %v300_v27, %v299_v39 }
  0x3f   :  { %v257_v53 = vsel %vm256_vm1, %v255_v20, %v254_v36  ;;  %v270_v55 = vrot.slane %v246_v7, 7  ;;  %v303_v56 = vsel %vm262_vm3, %v302_v28, %v301_v52  ;;  %v319_v57 = vsel %vm256_vm1, %v288_v48, %v318_v43  ;;  %v992_v48 = vld [vmem:[#allocation4 + $0x30] sm:$0xff]  }
  0x40   :  { %v260_v31 = vsel %vm259_vm2, %v258_v22, %v257_v53  ;;  %v272_v58 = vrot.slane %v247_v2, 6  ;;  %v305_v35 = vsel %vm265_vm4, %v304_v33, %v303_v56  ;;  %v320_v46 = vsel %vm259_vm2, %v290_v47, %v319_v57  ;;  %592 = vmatpush1.bf16.msra.mxu0 %v992_v48  ;;  %v995_v22 = vld [vmem:[#allocation4 + $0x48] sm:$0xff]  }
  0x41   :  { %v274_v59 = vrot.slane %v248_v4, 5  ;;  %v307_v60 = vsel %vm268_vm5, %v306_v42, %v305_v35  ;;  %v321_v61 = vsel %vm262_vm3, %v292_v49, %v320_v46  ;;  %v263_v62 = vsel %vm262_vm3, %v261_v29, %v260_v31  ;;  %593 = vmatprep.subr.bf16.mxu0 %v1053_v5 }
  0x42   :  { %v276_v63 = vrot.slane %v249_v8, 4  ;;  %v309_v1 = vpack.c.b16 %v307_v60, %v307_v60  ;;  %v322_v2 = vsel %vm265_vm4, %v294_v50, %v321_v61  ;;  %v266_v47 = vsel %vm265_vm4, %v264_v45, %v263_v62  ;;  %v993_v50 = vld [vmem:[#allocation4 + $0x38] sm:$0xff]  }
  0x43   :  { %v278_v4 = vrot.slane %v1212_v9, 3  ;;  %v269_v6 = vsel %vm268_vm5, %v267_v32, %v266_v47  ;;  %v271_v37 = vsel %vm253_vm0, %v270_v55, %v245_v0  ;;  %v280_v49 = vrot.slane %v251_v15, 2 }
  0x44   :  { %312 = vrot.lane.b32.xlu0 %v309_v1, %s1050_s0  ;;  %v273_v10 = vsel %vm256_vm1, %v272_v58, %v271_v37  ;;  %v325_v8 = vsel %vm253_vm0, %v298_v25, %v246_v7  ;;  %594 = vmatpush1.bf16.msra.mxu0 %v993_v50  ;;  %v996_v25 = vld [vmem:[#allocation4 + $0x50] sm:$0xff]   ;;  %v1054_v39 = vmov 1966171168   ;;  %v282_v32 = vpack.c.b16 %v269_v6, %v269_v6 }
  0x45   :  { %v275_v12 = vsel %vm259_vm2, %v274_v59, %v273_v10  ;;  %v326_v38 = vsel %vm256_vm1, %v300_v27, %v325_v8  ;;  %595 = vmatprep.subr.bf16.mxu0 %v1053_v5  ;;  %v997_v27 = vld [vmem:[#allocation4 + $0x58] sm:$0xff]  }
  0x46   :  { %v277_v14 = vsel %vm262_vm3, %v276_v63, %v275_v12  ;;  %v327_v9 = vsel %vm259_vm2, %v302_v28, %v326_v38  ;;  %v1268_v28 = vcombine.high %v1120_v18, %v1120_v18 }
  0x47   :  { %v279_v0 = vsel %vm265_vm4, %v278_v4, %v277_v14  ;;  %v328_v15 = vsel %vm262_vm3, %v304_v33, %v327_v9  ;;  %v1274_v33 = vcombine.high %v1182_v51, %v1182_v51 }
  0x48   :  { %v281_v20 = vsel %vm268_vm5, %v280_v49, %v279_v0  ;;  %v329_v7 = vsel %vm265_vm4, %v306_v42, %v328_v15  ;;  %596 = vmatpush1.bf16.msra.mxu0 %v994_v21  ;;  %v222_v29 = vpack.c.bf16 %v1268_v28, %v1268_v28  ;;  %v345_v42 = vunpack.c.l.s4 %v1054_v39 }
  0x49   :  { %597 = vmatprep.subr.bf16.mxu0 %v1053_v5  ;;  %v223_v36 = vpack.c.bf16 %v1274_v33, %v1274_v33  ;;  %v283_v59 = vpack.c.b16 %v281_v20, %v281_v20 }
  0x4a   :  { %v316_v30 = vunpack.c.l.b16 %v222_v29  ;;  %v346_v43 = vunpack.c.0.s8 %v345_v42 }
  0x4b   :  { %v317_v45 = vunpack.c.l.b16 %v223_v36 }
  0x4c   :  { %598 = vmatpush1.bf16.msra.mxu0 %v995_v22  ;;  %v323_v34 = vrot.slane %v316_v30, 2  ;;  %v1280_v53 = vsub.s32 %v346_v43, %v1106_v3 }
  0x4d   :  { %599 = vmatprep.subr.bf16.mxu0 %v1053_v5  ;;  %v330_v56 = vrot.slane %v317_v45, 2 }
  0x4f   :  { %v331_v35 = vsel %vm268_vm5, %v330_v56, %v329_v7 }
  0x50   :  { %600 = vmatpush1.bf16.msra.mxu0 %v996_v25  ;;  %v333_v60 = vpack.c.b16 %v331_v35, %v331_v35  ;;  %v939_v35 = vrot.slane %v1110_v11, 9 }
  0x51   :  { %601 = vmatprep.subr.bf16.mxu0 %v1053_v5  ;;  %v324_v5 = vsel %vm268_vm5, %v323_v34, %v322_v2 }
  0x52   :  { %v332_v52 = vpack.c.b16 %v324_v5, %v324_v5 }
  0x54   :  { %602 = vmatpush1.bf16.msra.mxu0 %v997_v27 }
  0xb0   :  { %v311_v55 = vpop.permute.xlu0 %310 }
  0xb1   :  { %v337_v57 = vsel %vm334_vm6, %v282_v32, %v311_v55  ;;  %v945_v55 = vrot.slane %v1120_v18, 9 }
  0xb2   :  { %v343_v31 = vcombine.low %v337_v57, %v332_v52 }
  0xb3   :  { %v186_v56 = vmax.f32 %v1120_v18, %v945_v55 }
  0xb4   :  { %v350_v58 = vrot.slane %v343_v31, %v1280_v53  ;;  %v1304_v31 = vsub.s32 0, %v1106_v3 }
  0xb5   :  { %v200_v57 = vmax.f32 %v186_v56, %v1268_v28  ;;  %v952_v28 = vrot.slane %v1182_v51, 9 }
  0xb6   :  { %v351_v46 = vcombine.high %v350_v58, %v350_v58  ;;  %v313_v62 = vpop.permute.xlu0 %312  ;;  %v358_v47 = vrot.slane %v350_v58, %v1280_v53 }
  0xb7   :  { %v340_v48 = vsel %vm334_vm6, %v283_v59, %v313_v62  ;;  %v1307_v58 = vrot.slane %v200_v57, %v1304_v31  ;;  %v943_v59 = vrot.slane %v1112_v13, 9 }
  0xb8   :  { %v365_v61 = vrot.slane %v351_v46, %v1280_v53  ;;  %v368_v63 = vcombine.low %v340_v48, %v333_v60  ;;  %v366_v12 = vcombine.high %v358_v47, %v358_v47  ;;  %v940_v46 = vrot.slane %v1118_v17, 9 }
  0xb9   :  { %v944_v60 = vrot.slane %v1124_v19, 9  ;;  %v184_v3 = vmax.f32 %v1112_v13, %v943_v59 }
  0xba   :  { %v367_v1 = vcombine.high %v365_v61, %v365_v61  ;;  %v375_v2 = vrot.slane %v368_v63, %v1280_v53  ;;  %v438_v38 = vcombine.low %v358_v47, %v365_v61  ;;  %v180_v61 = vmax.f32 %v1110_v11, %v939_v35 }
  0xbb   :  { %v181_v62 = vmax.f32 %v1118_v17, %v940_v46  ;;  %v185_v48 = vmax.f32 %v1124_v19, %v944_v60  ;;  %v1322_v47 = vmax.f32 %v1182_v51, %v952_v28 }
  0xbc   :  { %v376_v4 = vcombine.high %v375_v2, %v375_v2  ;;  %v383_v6 = vrot.slane %v375_v2, %v1280_v53  ;;  %v447_v21 = vrot.slane %v438_v38, %v1280_v53  ;;  %v194_v63 = vmax.f32 %v180_v61, %v1118_v17 }
  0xbd   :  { %v941_v2 = vrot.slane %v1114_v16, 9  ;;  %v199_v11 = vmax.f32 %v185_v48, %v1120_v18  ;;  %v207_v18 = vmax.f32 %v1322_v47, %v1274_v33 }
  0xbe   :  { %v390_v37 = vrot.slane %v376_v4, %v1280_v53  ;;  %v391_v49 = vcombine.high %v383_v6, %v383_v6  ;;  %v401_v10 = vunpack.i.h.s16 %v383_v6  ;;  %v953_v8 = vpack.i.b16 %v383_v6, %v367_v1  ;;  %v970_v6 = vld [vmem:[%s1440_s2] ss:$0 sm:$0xff] }
  0xbf   :  { %v195_v1 = vmax.f32 %v181_v62, %v1114_v16  ;;  %v198_v4 = vmax.f32 %v184_v3, %v1124_v19  ;;  %v182_v17 = vmax.f32 %v1114_v16, %v941_v2 }
  0xc0   :  { %v403_v50 = vunpack.i.h.s16 %v390_v37  ;;  %v392_v14 = vcombine.high %v390_v37, %v390_v37  ;;  %v405_v9 = vunpack.i.h.s16 %v391_v49  ;;  %v439_v0 = vcombine.low %v366_v12, %v953_v8  ;;  %v971_v8 = vld [vmem:[%s1441_s3] ss:$0 sm:$0xff] }
  0xc1   :  { %v954_v15 = vpack.i.b16 %v390_v37, %v401_v10  ;;  %v755_v37 = vrot.slane %v194_v63, %v1304_v31  ;;  %v942_v12 = vrot.slane %v1136_v26, 9 }
  0xc2   :  { %v955_v20 = vpack.i.b16 %v391_v49, %v403_v50  ;;  %v956_v7 = vpack.i.b16 %v392_v14, %v405_v9  ;;  %v454_v22 = vrot.slane %v439_v0, %v1280_v53  ;;  %v759_v49 = vrot.slane %v195_v1, %v1304_v31 }
  0xc3   :  { %v771_v50 = vrot.slane %v198_v4, %v1304_v31  ;;  %v775_v14 = vrot.slane %v199_v11, %v1304_v31  ;;  %v183_v16 = vmax.f32 %v1136_v26, %v942_v12 }
  0xc4   :  { %v440_v25 = vcombine.low %v954_v15, %v955_v20  ;;  %v470_v27 = vcombine.high %v447_v21, %v454_v22  ;;  %v469_v29 = vcombine.low %v447_v21, %v454_v22  ;;  %v468_v34 = vrot.slane %v956_v7, %v1280_v53 }
  0xc5   :  { %v808_v0 = vsel %vm253_vm0, %v759_v49, %v755_v37  ;;  %v946_v15 = vrot.slane %v1130_v23, 9  ;;  %v947_v20 = vrot.slane %v1164_v40, 9 }
  0xc6   :  { %v461_v30 = vrot.slane %v440_v25, %v1280_v53  ;;  %v486_v36 = vrot.slane %v470_v27, %v1280_v53  ;;  %v479_v43 = vrot.slane %v469_v29, %v1280_v53  ;;  %v196_v25 = vmax.f32 %v182_v17, %v1136_v26 }
  0xc7   :  { %v948_v27 = vrot.slane %v1132_v24, 9  ;;  %v197_v29 = vmax.f32 %v183_v16, %v1112_v13 }
  0xc8   :  { %v472_v39 = vcombine.high %v461_v30, %v468_v34  ;;  %v471_v42 = vcombine.low %v461_v30, %v468_v34  ;;  %v949_v30 = vrot.slane %v1172_v44, 9  ;;  %v1349_v34 = vmax.f32 %v1130_v23, %v946_v15 }
  0xc9   :  { %v767_v26 = vrot.slane %v197_v29, %v1304_v31  ;;  %v189_v13 = vmax.f32 %v1132_v24, %v948_v27 }
  0xca   :  { %v500_v5 = vrot.slane %v472_v39, %v1280_v53  ;;  %v493_v45 = vrot.slane %v471_v42, %v1280_v53  ;;  %v1352_v39 = vmax.f32 %v1164_v40, %v947_v20  ;;  %v201_v59 = vmax.f32 %v1349_v34, %v1164_v40 }
  0xcb   :  { %v203_v1 = vmax.f32 %v189_v13, %v1172_v44 }
  0xcc   :  { %v502_v32 = vcombine.low %v486_v36, %v500_v5  ;;  %v501_v52 = vcombine.low %v479_v43, %v493_v45  ;;  %v763_v5 = vrot.slane %v196_v25, %v1304_v31  ;;  %v950_v43 = vrot.slane %v1166_v41, 9 }
  0xcd   :  { %v951_v45 = vrot.slane %v1187_v54, 9  ;;  %v202_v63 = vmax.f32 %v1352_v39, %v1132_v24  ;;  %v791_v13 = vrot.slane %v203_v1, %v1304_v31 }
  0xce   :  { %969 = vmatprep.mubr.msk.bf16.mxu0 %vm334_vm6, %v502_v32  ;;  %v190_v32 = vmax.f32 %v1172_v44, %v949_v30  ;;  %v809_v56 = vsel %vm256_vm1, %v763_v5, %v808_v0  ;;  %v191_v35 = vmax.f32 %v1166_v41, %v950_v43  ;;  %v783_v43 = vrot.slane %v201_v59, %v1304_v31 }
  0xcf   :  { %612 = vmatmul.mubr.bf16.vlgmr.msra.gmra.mrb[0].mxu0 %v501_v52  ;;  %v810_v57 = vsel %vm259_vm2, %v767_v26, %v809_v56  ;;  %v192_v46 = vmax.f32 %v1187_v54, %v951_v45  ;;  %v787_v45 = vrot.slane %v202_v63, %v1304_v31  ;;  %v807_v56 = vrot.slane %v207_v18, %v1304_v31 }
  0xd0   :  { %v811_v48 = vsel %vm262_vm3, %v771_v50, %v810_v57  ;;  %v204_v17 = vmax.f32 %v190_v32, %v1166_v41  ;;  %v205_v39 = vmax.f32 %v191_v35, %v1187_v54 }
  0xd1   :  { %v812_v49 = vsel %vm265_vm4, %v775_v14, %v811_v48  ;;  %v206_v5 = vmax.f32 %v192_v46, %v1182_v51  ;;  %v814_v57 = vsel %vm253_vm0, %v787_v45, %v783_v43 }
  0xd2   :  { %v813_v27 = vsel %vm268_vm5, %v1307_v58, %v812_v49  ;;  %v795_v54 = vrot.slane %v204_v17, %v1304_v31  ;;  %v815_v59 = vsel %vm256_vm1, %v791_v13, %v814_v57 }
  0xd3   :  { %823 = vst.msk [vmem:[%s1442_s4] sm:$0x7f] %vm822_vm7, %v813_v27  ;;  %v803_v51 = vrot.slane %v206_v5, %v1304_v31 }
 0x1a2   :  { %v613_v10 = vpop.f32.mrb[0].mxu0 }
 0x1a3   :  { %v627_v19 = vmul.f32 %v970_v6, %v613_v10  ;;  %v615_v38 = vpop.f32.mrb[1].mxu0 }
 0x1a4   :  { %v616_v9 = vpop.f32.mrb[2].mxu0 }
 0x1a5   :  { %v636_v7 = vadd.f32 %v971_v8, %v627_v19  ;;  %v628_v21 = vmul.f32 %v970_v6, %v616_v9  ;;  %v618_v22 = vpop.f32.mrb[3].mxu0 }
 0x1a7   :  { %v638_v42 = vmax.f32 %v636_v7, 0.0  ;;  %v637_v36 = vadd.f32 %v971_v8, %v628_v21 }
 0x1a9   :  { %v642_v52 = vcombine.high %v638_v42, %v638_v42  ;;  %v649_v23 = vrot.slane %v638_v42, %v1280_v53  ;;  %v639_v55 = vmax.f32 %v637_v36, 0.0 }
 0x1ab   :  { %v656_v60 = vrot.slane %v642_v52, %v1280_v53  ;;  %v657_v61 = vcombine.high %v649_v23, %v649_v23  ;;  %v665_v62 = vrot.slane %v649_v23, %v1280_v53  ;;  %v691_v28 = vcombine.high %v639_v55, %v639_v55 }
 0x1ac   :  { %v698_v3 = vrot.slane %v639_v55, %v1280_v53  ;;  %v799_v23 = vrot.slane %v205_v39, %v1304_v31 }
 0x1ad   :  { %v658_v2 = vcombine.high %v656_v60, %v656_v60  ;;  %v672_v4 = vrot.slane %v656_v60, %v1280_v53  ;;  %v679_v40 = vrot.slane %v657_v61, %v1280_v53  ;;  %v705_v11 = vrot.slane %v691_v28, %v1280_v53 }
 0x1ae   :  { %v706_v6 = vcombine.high %v698_v3, %v698_v3  ;;  %v714_v37 = vrot.slane %v698_v3, %v1280_v53  ;;  %v816_v61 = vsel %vm259_vm2, %v795_v54, %v815_v59 }
 0x1af   :  { %v686_v10 = vrot.slane %v658_v2, %v1280_v53  ;;  %v707_v8 = vcombine.high %v705_v11, %v705_v11  ;;  %v721_v24 = vrot.slane %v705_v11, %v1280_v53  ;;  %v688_v44 = vcombine.high %v672_v4, %v672_v4 }
 0x1b0   :  { %v728_v12 = vrot.slane %v706_v6, %v1280_v53  ;;  %v736_v19 = vcombine.high %v714_v37, %v714_v37  ;;  %v825_v38 = vcombine.low %v665_v62, %v679_v40  ;;  %v972_v50 = vcombine.high %v665_v62, %v679_v40 }
 0x1b1   :  { %v690_v9 = vcombine.high %v686_v10, %v686_v10  ;;  %v827_v0 = vcombine.low %v672_v4, %v686_v10  ;;  %v855_v16 = vrot.slane %v688_v44, %v1280_v53  ;;  %v735_v15 = vrot.slane %v707_v8, %v1280_v53 }
 0x1b2   :  { %v737_v14 = vcombine.high %v728_v12, %v728_v12  ;;  %v834_v41 = vrot.slane %v825_v38, %v1280_v53  ;;  %v841_v20 = vrot.slane %v972_v50, %v1280_v53  ;;  %v874_v7 = vcombine.low %v728_v12, %v736_v19 }
 0x1b3   :  { %v873_v21 = vcombine.low %v690_v9, %v714_v37  ;;  %v848_v22 = vrot.slane %v827_v0, %v1280_v53  ;;  %v903_v25 = vrot.slane %v735_v15, %v1280_v53  ;;  %v817_v62 = vsel %vm262_vm3, %v799_v23, %v816_v61 }
 0x1b4   :  { %v856_v29 = vcombine.low %v834_v41, %v841_v20  ;;  %v875_v30 = vcombine.low %v737_v14, %v721_v24  ;;  %v889_v34 = vrot.slane %v874_v7, %v1280_v53  ;;  %v818_v3 = vsel %vm265_vm4, %v803_v51, %v817_v62 }
 0x1b5   :  { %v857_v42 = vcombine.low %v848_v22, %v855_v16  ;;  %v882_v36 = vrot.slane %v873_v21, %v1280_v53  ;;  %v819_v33 = vsel %vm268_vm5, %v807_v56, %v818_v3 }
 0x1b6   :  { %v864_v58 = vrot.slane %v856_v29, %v1280_v53  ;;  %v896_v26 = vrot.slane %v875_v30, %v1280_v53  ;;  %824 = vst.msk [vmem:[%s1442_s4 + $0x10] sm:$0x7f] %vm822_vm7, %v819_v33 }
 0x1b7   :  { %v871_v32 = vrot.slane %v857_v42, %v1280_v53  ;;  %v904_v52 = vcombine.low %v882_v36, %v889_v34 }
 0x1b8   :  { %v905_v55 = vcombine.low %v896_v26, %v903_v25 }
 0x1b9   :  { %v872_v35 = vcombine.low %v864_v58, %v871_v32  ;;  %v912_v46 = vrot.slane %v904_v52, %v1280_v53 }
 0x1ba   :  { %v919_v60 = vrot.slane %v905_v55, %v1280_v53 }
 0x1bb   :  { %921 = vrot.lane.b32.xlu1 %v872_v35, %s1050_s0 }
 0x1bc   :  { %v920_v28 = vcombine.low %v912_v46, %v919_v60 }
 0x1bf   :  { %923 = vrot.lane.b32.xlu1 %v920_v28, %s1050_s0 }
 0x22d   :  { %v922_v53 = vpop.permute.xlu1 %921 }
 0x22e   :  { %928 = vst.msk [vmem:[%s1442_s4] sm:$0x7f] %vm927_vm8, %v922_v53 }
 0x22f   :  { %930 = vst.msk [vmem:[%s1442_s4 + $0x8] sm:$0x7f] %vm929_vm9, %v922_v53 }
 0x231   :  { %v924_v31 = vpop.permute.xlu1 %923 }
 0x232   :  { %931 = vst.msk [vmem:[%s1442_s4 + $0x10] sm:$0x7f] %vm927_vm8, %v924_v31 }
 0x233   :  { %932 = vst.msk [vmem:[%s1442_s4 + $0x18] sm:$0x7f] %vm929_vm9, %v924_v31 }
 0x234   :  { %937 = vsyncpa [#allocation3], 1 }
 0x235   :  { %938 = vsyncpa [#allocation5], 1 }

</bundles_post_ra>
